<compile_context>
chip_gen: v7x
topology: tpu7x:2x2x1
jax: 0.10.0
libtpu: 0.0.40
codegen_flags: <defaults>
</compile_context>

<pallas_src>
import functools
import math

import jax
import jax.numpy as jnp
from jax import lax
from jax.experimental import pallas as pl
from jax.experimental.pallas import tpu as pltpu

F32 = jnp.float32


# ----------------------------------------------------------------------------
# Weight preprocessing: fold the 2x nearest upsample into the 3x3 conv weights.
# ----------------------------------------------------------------------------
def _fold_upsample_into_weights(w):
    """w: (C_out, C_in, 3, 3) PyTorch layout -> (16, C_in, C_out).

    Index = ((py*2 + px)*2 + a)*2 + b, where (py, px) is the output parity on
    the 2x-upsampled grid and (a, b) is the 2x2 tap on the (1-padded) low-res
    input.  Each entry is the sum of the 3x3 weights that land on that tap.
    """
    # G[parity, tap, kernel_index]: which 3x3 rows/cols collapse onto each tap.
    G = jnp.array([[[1., 0., 0.],
                    [0., 1., 1.]],
                   [[1., 1., 0.],
                    [0., 0., 1.]]], F32)
    C_out, C_in = w.shape[0], w.shape[1]
    wsub = jnp.einsum('par,qbs,oirs->pqabio', G, G, w.astype(F32))
    return wsub.reshape(16, C_in, C_out)


# ----------------------------------------------------------------------------
# Pallas kernel: fused upsample2x + conv3x3(pad=1) + bias for one batch element.
# ----------------------------------------------------------------------------
def _up_conv_kernel(x_ref, w_ref, b_ref, o_ref, *, H, W, C_in, C_out):
    """
    x_ref : (1, H+2, W+2, C_in)  zero-padded low-res input (NHWC, one batch)
    w_ref : (16, C_in, C_out)    subpixel-folded weights
    b_ref : (1, C_out)           conv bias
    o_ref : (1, 4, H, W, C_out)  conv output, dim1 = py*2 + px (subpixel layout)
    """
    bias = b_ref[...]                                        # (1, C_out)
    for py in range(2):
        for px in range(2):
            acc = jnp.zeros((H * W, C_out), F32)
            for ta in range(2):                              # 2x2 low-res taps
                for tb in range(2):
                    patch = x_ref[0,
                                  py + ta: py + ta + H,
                                  px + tb: px + tb + W, :]   # (H, W, C_in)
                    idx = ((py * 2 + px) * 2 + ta) * 2 + tb  # static
                    acc = acc + jnp.dot(patch.reshape(H * W, C_in),
                                        w_ref[idx],
                                        preferred_element_type=F32)
            o_ref[0, py * 2 + px, :, :, :] = (acc + bias).reshape(H, W, C_out)


# ----------------------------------------------------------------------------
# Public wrapper: PyTorch `up(in_ch, out_ch).forward(present, former)`.
# ----------------------------------------------------------------------------
def up_forward(w, b, present_nchw, former_nchw):
    """
    w            : (C_out, C_in, 3, 3) conv weight (PyTorch layout)
    b            : (C_out,)            conv bias
    present_nchw : (B, C_in, H, W)
    former_nchw  : (B, C_f, 2H, 2W)
    returns      : (B, C_out + C_f, 2H, 2W)   == torch.cat([conv(up(present)), former], 1)
    """
    B, C_in, H, W = present_nchw.shape
    C_out = w.shape[0]

    # NCHW -> NHWC + 1-pixel zero pad (one fused XLA copy; channels -> lanes).
    xpad = jnp.pad(jnp.transpose(present_nchw.astype(F32), (0, 2, 3, 1)),
                   ((0, 0), (1, 1), (1, 1), (0, 0)))
    wsub = _fold_upsample_into_weights(w)
    bias = b.astype(F32).reshape(1, C_out)

    flops = 2 * 16 * B * H * W * C_in * C_out
    bytes_accessed = 4 * (xpad.size + wsub.size + bias.size
                          + B * 4 * H * W * C_out)

    conv_sub = pl.pallas_call(
        functools.partial(_up_conv_kernel, H=H, W=W, C_in=C_in, C_out=C_out),
        out_shape=jax.ShapeDtypeStruct((B, 4, H, W, C_out), F32),
        grid_spec=pltpu.PrefetchScalarGridSpec(
            num_scalar_prefetch=0,
            grid=(B,),
            in_specs=[
                pl.BlockSpec((1, H + 2, W + 2, C_in), lambda bb: (bb, 0, 0, 0)),
                pl.BlockSpec((16, C_in, C_out), lambda bb: (0, 0, 0)),
                pl.BlockSpec((1, C_out), lambda bb: (0, 0)),
            ],
            out_specs=pl.BlockSpec((1, 4, H, W, C_out),
                                   lambda bb: (bb, 0, 0, 0, 0)),
        ),
        compiler_params=pltpu.CompilerParams(
            dimension_semantics=("parallel",)),
        cost_estimate=pl.CostEstimate(flops=flops, transcendentals=0,
                                      bytes_accessed=bytes_accessed),
    )(xpad, wsub, bias)

    # Re-interleave parities; this single transpose replaces the NHWC->NCHW
    # boundary transpose we would have needed anyway.
    conv_nchw = (conv_sub.reshape(B, 2, 2, H, W, C_out)
                 .transpose(0, 5, 3, 1, 4, 2)          # (B, C_out, H, 2, W, 2)
                 .reshape(B, C_out, 2 * H, 2 * W))
    # torch.cat([present, former], dim=1); `former` passes through untouched.
    return jnp.concatenate([conv_nchw, former_nchw.astype(F32)], axis=1)


# ----------------------------------------------------------------------------
# Pure-JAX reference (upsample -> conv -> cat), for validation only.
# ----------------------------------------------------------------------------
def up_reference(w, b, present_nchw, former_nchw):
    up2 = jnp.repeat(jnp.repeat(present_nchw, 2, axis=2), 2, axis=3)
    conv = lax.conv_general_dilated(
        up2, w, window_strides=(1, 1), padding=((1, 1), (1, 1)),
        dimension_numbers=('NCHW', 'OIHW', 'NCHW'))
    conv = conv + b.reshape(1, -1, 1, 1)
    return jnp.concatenate([conv, former_nchw], axis=1)


# ----------------------------------------------------------------------------
if __name__ == "__main__":
    # Small shapes mirroring `up(32, 16)` in the parent network:
    # present (B, 32, 8, 8) -> upsampled (B, 32, 16, 16), former (B, 16, 16, 16).
    B, C_in, C_out, C_f, H, W = 2, 32, 16, 16, 8, 8

    key = jax.random.PRNGKey(0)
    k_w, k_b, k_p, k_f = jax.random.split(key, 4)

    # Quantize weights to multiples of 1/256 in [-0.25, 0.25] and activations to
    # bf16, so every bf16 MXU pass (whatever the backend's default matmul
    # precision) is exact and the kernel matches the lax.conv reference to
    # float32 accumulation error.
    std = math.sqrt(2.0 / (9 * C_in + 9 * C_out))
    w = jnp.round(jnp.clip(jax.random.normal(k_w, (C_out, C_in, 3, 3), F32) * std,
                           -0.25, 0.25) * 256.0) / 256.0
    bias = jnp.round(jax.random.normal(k_b, (C_out,), F32) * 0.1 * 256.0) / 256.0
    present = (jax.random.normal(k_p, (B, C_in, H, W), F32)
               .astype(jnp.bfloat16).astype(F32))
    former = jax.random.normal(k_f, (B, C_f, 2 * H, 2 * W), F32)

    out = jax.jit(up_forward)(w, bias, present, former)
    out = jax.block_until_ready(out)

    ref = jax.jit(up_reference)(w, bias, present, former)
    ref = jax.block_until_ready(ref)

    assert out.shape == (B, C_out + C_f, 2 * H, 2 * W), out.shape
    err = float(jnp.max(jnp.abs(out - ref)))
    assert err < 1e-3, f"max abs err vs reference: {err}"
    assert bool(jnp.array_equal(out[:, C_out:], former))   # cat passes former through
    print("KERNEL_OK")
</pallas_src>

<mosaic_0001>
module attributes {stable_mosaic.version = 11 : i64} {
  func.func @_up_conv_kernel(%arg0: i32, %arg1: memref<1x10x10x32xf32, #tpu.memory_space<vmem>>, %arg2: memref<16x32x16xf32, #tpu.memory_space<vmem>>, %arg3: memref<1x16xf32, #tpu.memory_space<vmem>>, %arg4: memref<1x4x8x8x16xf32, #tpu.memory_space<vmem>>) attributes {dimension_semantics = [#tpu.dimension_semantics<parallel>], iteration_bounds = array<i64: 2>, scalar_prefetch = 0 : i64, scratch_operands = 0 : i64, tpu.core_type = #tpu.core_type<tc>, window_params = [{transform_indices = @transform_0, window_bounds = array<i64: 1, 10, 10, 32>}, {pipeline_mode = #tpu.pipeline_mode<synchronous>, transform_indices = @transform_1, window_bounds = array<i64: 16, 32, 16>}, {pipeline_mode = #tpu.pipeline_mode<synchronous>, transform_indices = @transform_2, window_bounds = array<i64: 1, 16>}, {transform_indices = @transform_3, window_bounds = array<i64: 1, 4, 8, 8, 16>}]} {
    %c0 = arith.constant 0 : index
    %c0_0 = arith.constant 0 : index
    %0 = vector.load %arg3[%c0, %c0_0] : memref<1x16xf32, #tpu.memory_space<vmem>>, vector<1x16xf32>
    %cst = arith.constant 0.000000e+00 : f32
    %1 = vector.broadcast %cst : f32 to vector<64x16xf32>
    %c0_1 = arith.constant 0 : index
    %c0_2 = arith.constant 0 : index
    %c0_3 = arith.constant 0 : index
    %c0_4 = arith.constant 0 : index
    %2 = vector.load %arg1[%c0_1, %c0_2, %c0_3, %c0_4] : memref<1x10x10x32xf32, #tpu.memory_space<vmem>>, vector<1x8x8x32xf32>
    %3 = vector.shape_cast %2 : vector<1x8x8x32xf32> to vector<8x8x32xf32>
    %4 = vector.shape_cast %3 : vector<8x8x32xf32> to vector<64x32xf32>
    %c0_5 = arith.constant 0 : index
    %c0_6 = arith.constant 0 : index
    %c0_7 = arith.constant 0 : index
    %5 = vector.load %arg2[%c0_5, %c0_6, %c0_7] : memref<16x32x16xf32, #tpu.memory_space<vmem>>, vector<1x32x16xf32>
    %6 = vector.shape_cast %5 : vector<1x32x16xf32> to vector<32x16xf32>
    %cst_8 = arith.constant dense<0.000000e+00> : vector<64x16xf32>
    %7 = tpu.matmul %4, %6, %cst_8 {dimension_numbers = #tpu.dot_dimension_numbers<[1], [0], [0], [1], [0, 0, 1, 1], [], []>} : vector<64x32xf32>, vector<32x16xf32>, vector<64x16xf32> -> vector<64x16xf32>
    %8 = arith.addf %1, %7 : vector<64x16xf32>
    %c0_9 = arith.constant 0 : index
    %c0_10 = arith.constant 0 : index
    %c1 = arith.constant 1 : index
    %c0_11 = arith.constant 0 : index
    %9 = vector.load %arg1[%c0_9, %c0_10, %c1, %c0_11] : memref<1x10x10x32xf32, #tpu.memory_space<vmem>>, vector<1x8x8x32xf32>
    %10 = vector.shape_cast %9 : vector<1x8x8x32xf32> to vector<8x8x32xf32>
    %11 = vector.shape_cast %10 : vector<8x8x32xf32> to vector<64x32xf32>
    %c1_12 = arith.constant 1 : index
    %c0_13 = arith.constant 0 : index
    %c0_14 = arith.constant 0 : index
    %12 = vector.load %arg2[%c1_12, %c0_13, %c0_14] : memref<16x32x16xf32, #tpu.memory_space<vmem>>, vector<1x32x16xf32>
    %13 = vector.shape_cast %12 : vector<1x32x16xf32> to vector<32x16xf32>
    %cst_15 = arith.constant dense<0.000000e+00> : vector<64x16xf32>
    %14 = tpu.matmul %11, %13, %cst_15 {dimension_numbers = #tpu.dot_dimension_numbers<[1], [0], [0], [1], [0, 0, 1, 1], [], []>} : vector<64x32xf32>, vector<32x16xf32>, vector<64x16xf32> -> vector<64x16xf32>
    %15 = arith.addf %8, %14 : vector<64x16xf32>
    %c0_16 = arith.constant 0 : index
    %c1_17 = arith.constant 1 : index
    %c0_18 = arith.constant 0 : index
    %c0_19 = arith.constant 0 : index
    %16 = vector.load %arg1[%c0_16, %c1_17, %c0_18, %c0_19] : memref<1x10x10x32xf32, #tpu.memory_space<vmem>>, vector<1x8x8x32xf32>
    %17 = vector.shape_cast %16 : vector<1x8x8x32xf32> to vector<8x8x32xf32>
    %18 = vector.shape_cast %17 : vector<8x8x32xf32> to vector<64x32xf32>
    %c2 = arith.constant 2 : index
    %c0_20 = arith.constant 0 : index
    %c0_21 = arith.constant 0 : index
    %19 = vector.load %arg2[%c2, %c0_20, %c0_21] : memref<16x32x16xf32, #tpu.memory_space<vmem>>, vector<1x32x16xf32>
    %20 = vector.shape_cast %19 : vector<1x32x16xf32> to vector<32x16xf32>
    %cst_22 = arith.constant dense<0.000000e+00> : vector<64x16xf32>
    %21 = tpu.matmul %18, %20, %cst_22 {dimension_numbers = #tpu.dot_dimension_numbers<[1], [0], [0], [1], [0, 0, 1, 1], [], []>} : vector<64x32xf32>, vector<32x16xf32>, vector<64x16xf32> -> vector<64x16xf32>
    %22 = arith.addf %15, %21 : vector<64x16xf32>
    %c0_23 = arith.constant 0 : index
    %c1_24 = arith.constant 1 : index
    %c1_25 = arith.constant 1 : index
    %c0_26 = arith.constant 0 : index
    %23 = vector.load %arg1[%c0_23, %c1_24, %c1_25, %c0_26] : memref<1x10x10x32xf32, #tpu.memory_space<vmem>>, vector<1x8x8x32xf32>
    %24 = vector.shape_cast %23 : vector<1x8x8x32xf32> to vector<8x8x32xf32>
    %25 = vector.shape_cast %24 : vector<8x8x32xf32> to vector<64x32xf32>
    %c3 = arith.constant 3 : index
    %c0_27 = arith.constant 0 : index
    %c0_28 = arith.constant 0 : index
    %26 = vector.load %arg2[%c3, %c0_27, %c0_28] : memref<16x32x16xf32, #tpu.memory_space<vmem>>, vector<1x32x16xf32>
    %27 = vector.shape_cast %26 : vector<1x32x16xf32> to vector<32x16xf32>
    %cst_29 = arith.constant dense<0.000000e+00> : vector<64x16xf32>
    %28 = tpu.matmul %25, %27, %cst_29 {dimension_numbers = #tpu.dot_dimension_numbers<[1], [0], [0], [1], [0, 0, 1, 1], [], []>} : vector<64x32xf32>, vector<32x16xf32>, vector<64x16xf32> -> vector<64x16xf32>
    %29 = arith.addf %22, %28 : vector<64x16xf32>
    %30 = vector.broadcast %0 : vector<1x16xf32> to vector<64x16xf32>
    %31 = arith.addf %29, %30 : vector<64x16xf32>
    %32 = vector.shape_cast %31 : vector<64x16xf32> to vector<8x8x16xf32>
    %c0_30 = arith.constant 0 : index
    %c0_31 = arith.constant 0 : index
    %c0_32 = arith.constant 0 : index
    %c0_33 = arith.constant 0 : index
    %c0_34 = arith.constant 0 : index
    %33 = vector.load %arg4[%c0_30, %c0_31, %c0_32, %c0_33, %c0_34] : memref<1x4x8x8x16xf32, #tpu.memory_space<vmem>>, vector<1x1x8x8x16xf32>
    %34 = vector.shape_cast %33 : vector<1x1x8x8x16xf32> to vector<8x8x16xf32>
    %35 = vector.shape_cast %32 : vector<8x8x16xf32> to vector<1x1x8x8x16xf32>
    tpu.vector_store %arg4[%c0_30, %c0_31, %c0_32, %c0_33, %c0_34], %35 {strides = array<i32>} : memref<1x4x8x8x16xf32, #tpu.memory_space<vmem>>, vector<1x1x8x8x16xf32>,
    %cst_35 = arith.constant 0.000000e+00 : f32
    %36 = vector.broadcast %cst_35 : f32 to vector<64x16xf32>
    %c0_36 = arith.constant 0 : index
    %c0_37 = arith.constant 0 : index
    %c1_38 = arith.constant 1 : index
    %c0_39 = arith.constant 0 : index
    %37 = vector.load %arg1[%c0_36, %c0_37, %c1_38, %c0_39] : memref<1x10x10x32xf32, #tpu.memory_space<vmem>>, vector<1x8x8x32xf32>
    %38 = vector.shape_cast %37 : vector<1x8x8x32xf32> to vector<8x8x32xf32>
    %39 = vector.shape_cast %38 : vector<8x8x32xf32> to vector<64x32xf32>
    %c4 = arith.constant 4 : index
    %c0_40 = arith.constant 0 : index
    %c0_41 = arith.constant 0 : index
    %40 = vector.load %arg2[%c4, %c0_40, %c0_41] : memref<16x32x16xf32, #tpu.memory_space<vmem>>, vector<1x32x16xf32>
    %41 = vector.shape_cast %40 : vector<1x32x16xf32> to vector<32x16xf32>
    %cst_42 = arith.constant dense<0.000000e+00> : vector<64x16xf32>
    %42 = tpu.matmul %39, %41, %cst_42 {dimension_numbers = #tpu.dot_dimension_numbers<[1], [0], [0], [1], [0, 0, 1, 1], [], []>} : vector<64x32xf32>, vector<32x16xf32>, vector<64x16xf32> -> vector<64x16xf32>
    %43 = arith.addf %36, %42 : vector<64x16xf32>
    %c0_43 = arith.constant 0 : index
    %c0_44 = arith.constant 0 : index
    %c2_45 = arith.constant 2 : index
    %c0_46 = arith.constant 0 : index
    %44 = vector.load %arg1[%c0_43, %c0_44, %c2_45, %c0_46] : memref<1x10x10x32xf32, #tpu.memory_space<vmem>>, vector<1x8x8x32xf32>
    %45 = vector.shape_cast %44 : vector<1x8x8x32xf32> to vector<8x8x32xf32>
    %46 = vector.shape_cast %45 : vector<8x8x32xf32> to vector<64x32xf32>
    %c5 = arith.constant 5 : index
    %c0_47 = arith.constant 0 : index
    %c0_48 = arith.constant 0 : index
    %47 = vector.load %arg2[%c5, %c0_47, %c0_48] : memref<16x32x16xf32, #tpu.memory_space<vmem>>, vector<1x32x16xf32>
    %48 = vector.shape_cast %47 : vector<1x32x16xf32> to vector<32x16xf32>
    %cst_49 = arith.constant dense<0.000000e+00> : vector<64x16xf32>
    %49 = tpu.matmul %46, %48, %cst_49 {dimension_numbers = #tpu.dot_dimension_numbers<[1], [0], [0], [1], [0, 0, 1, 1], [], []>} : vector<64x32xf32>, vector<32x16xf32>, vector<64x16xf32> -> vector<64x16xf32>
    %50 = arith.addf %43, %49 : vector<64x16xf32>
    %c0_50 = arith.constant 0 : index
    %c1_51 = arith.constant 1 : index
    %c1_52 = arith.constant 1 : index
    %c0_53 = arith.constant 0 : index
    %51 = vector.load %arg1[%c0_50, %c1_51, %c1_52, %c0_53] : memref<1x10x10x32xf32, #tpu.memory_space<vmem>>, vector<1x8x8x32xf32>
    %52 = vector.shape_cast %51 : vector<1x8x8x32xf32> to vector<8x8x32xf32>
    %53 = vector.shape_cast %52 : vector<8x8x32xf32> to vector<64x32xf32>
    %c6 = arith.constant 6 : index
    %c0_54 = arith.constant 0 : index
    %c0_55 = arith.constant 0 : index
    %54 = vector.load %arg2[%c6, %c0_54, %c0_55] : memref<16x32x16xf32, #tpu.memory_space<vmem>>, vector<1x32x16xf32>
    %55 = vector.shape_cast %54 : vector<1x32x16xf32> to vector<32x16xf32>
    %cst_56 = arith.constant dense<0.000000e+00> : vector<64x16xf32>
    %56 = tpu.matmul %53, %55, %cst_56 {dimension_numbers = #tpu.dot_dimension_numbers<[1], [0], [0], [1], [0, 0, 1, 1], [], []>} : vector<64x32xf32>, vector<32x16xf32>, vector<64x16xf32> -> vector<64x16xf32>
    %57 = arith.addf %50, %56 : vector<64x16xf32>
    %c0_57 = arith.constant 0 : index
    %c1_58 = arith.constant 1 : index
    %c2_59 = arith.constant 2 : index
    %c0_60 = arith.constant 0 : index
    %58 = vector.load %arg1[%c0_57, %c1_58, %c2_59, %c0_60] : memref<1x10x10x32xf32, #tpu.memory_space<vmem>>, vector<1x8x8x32xf32>
    %59 = vector.shape_cast %58 : vector<1x8x8x32xf32> to vector<8x8x32xf32>
    %60 = vector.shape_cast %59 : vector<8x8x32xf32> to vector<64x32xf32>
    %c7 = arith.constant 7 : index
    %c0_61 = arith.constant 0 : index
    %c0_62 = arith.constant 0 : index
    %61 = vector.load %arg2[%c7, %c0_61, %c0_62] : memref<16x32x16xf32, #tpu.memory_space<vmem>>, vector<1x32x16xf32>
    %62 = vector.shape_cast %61 : vector<1x32x16xf32> to vector<32x16xf32>
    %cst_63 = arith.constant dense<0.000000e+00> : vector<64x16xf32>
    %63 = tpu.matmul %60, %62, %cst_63 {dimension_numbers = #tpu.dot_dimension_numbers<[1], [0], [0], [1], [0, 0, 1, 1], [], []>} : vector<64x32xf32>, vector<32x16xf32>, vector<64x16xf32> -> vector<64x16xf32>
    %64 = arith.addf %57, %63 : vector<64x16xf32>
    %65 = vector.broadcast %0 : vector<1x16xf32> to vector<64x16xf32>
    %66 = arith.addf %64, %65 : vector<64x16xf32>
    %67 = vector.shape_cast %66 : vector<64x16xf32> to vector<8x8x16xf32>
    %c0_64 = arith.constant 0 : index
    %c1_65 = arith.constant 1 : index
    %c0_66 = arith.constant 0 : index
    %c0_67 = arith.constant 0 : index
    %c0_68 = arith.constant 0 : index
    %68 = vector.load %arg4[%c0_64, %c1_65, %c0_66, %c0_67, %c0_68] : memref<1x4x8x8x16xf32, #tpu.memory_space<vmem>>, vector<1x1x8x8x16xf32>
    %69 = vector.shape_cast %68 : vector<1x1x8x8x16xf32> to vector<8x8x16xf32>
    %70 = vector.shape_cast %67 : vector<8x8x16xf32> to vector<1x1x8x8x16xf32>
    tpu.vector_store %arg4[%c0_64, %c1_65, %c0_66, %c0_67, %c0_68], %70 {strides = array<i32>} : memref<1x4x8x8x16xf32, #tpu.memory_space<vmem>>, vector<1x1x8x8x16xf32>,
    %cst_69 = arith.constant 0.000000e+00 : f32
    %71 = vector.broadcast %cst_69 : f32 to vector<64x16xf32>
    %c0_70 = arith.constant 0 : index
    %c1_71 = arith.constant 1 : index
    %c0_72 = arith.constant 0 : index
    %c0_73 = arith.constant 0 : index
    %72 = vector.load %arg1[%c0_70, %c1_71, %c0_72, %c0_73] : memref<1x10x10x32xf32, #tpu.memory_space<vmem>>, vector<1x8x8x32xf32>
    %73 = vector.shape_cast %72 : vector<1x8x8x32xf32> to vector<8x8x32xf32>
    %74 = vector.shape_cast %73 : vector<8x8x32xf32> to vector<64x32xf32>
    %c8 = arith.constant 8 : index
    %c0_74 = arith.constant 0 : index
    %c0_75 = arith.constant 0 : index
    %75 = vector.load %arg2[%c8, %c0_74, %c0_75] : memref<16x32x16xf32, #tpu.memory_space<vmem>>, vector<1x32x16xf32>
    %76 = vector.shape_cast %75 : vector<1x32x16xf32> to vector<32x16xf32>
    %cst_76 = arith.constant dense<0.000000e+00> : vector<64x16xf32>
    %77 = tpu.matmul %74, %76, %cst_76 {dimension_numbers = #tpu.dot_dimension_numbers<[1], [0], [0], [1], [0, 0, 1, 1], [], []>} : vector<64x32xf32>, vector<32x16xf32>, vector<64x16xf32> -> vector<64x16xf32>
    %78 = arith.addf %71, %77 : vector<64x16xf32>
    %c0_77 = arith.constant 0 : index
    %c1_78 = arith.constant 1 : index
    %c1_79 = arith.constant 1 : index
    %c0_80 = arith.constant 0 : index
    %79 = vector.load %arg1[%c0_77, %c1_78, %c1_79, %c0_80] : memref<1x10x10x32xf32, #tpu.memory_space<vmem>>, vector<1x8x8x32xf32>
    %80 = vector.shape_cast %79 : vector<1x8x8x32xf32> to vector<8x8x32xf32>
    %81 = vector.shape_cast %80 : vector<8x8x32xf32> to vector<64x32xf32>
    %c9 = arith.constant 9 : index
    %c0_81 = arith.constant 0 : index
    %c0_82 = arith.constant 0 : index
    %82 = vector.load %arg2[%c9, %c0_81, %c0_82] : memref<16x32x16xf32, #tpu.memory_space<vmem>>, vector<1x32x16xf32>
    %83 = vector.shape_cast %82 : vector<1x32x16xf32> to vector<32x16xf32>
    %cst_83 = arith.constant dense<0.000000e+00> : vector<64x16xf32>
    %84 = tpu.matmul %81, %83, %cst_83 {dimension_numbers = #tpu.dot_dimension_numbers<[1], [0], [0], [1], [0, 0, 1, 1], [], []>} : vector<64x32xf32>, vector<32x16xf32>, vector<64x16xf32> -> vector<64x16xf32>
    %85 = arith.addf %78, %84 : vector<64x16xf32>
    %c0_84 = arith.constant 0 : index
    %c2_85 = arith.constant 2 : index
    %c0_86 = arith.constant 0 : index
    %c0_87 = arith.constant 0 : index
    %86 = vector.load %arg1[%c0_84, %c2_85, %c0_86, %c0_87] : memref<1x10x10x32xf32, #tpu.memory_space<vmem>>, vector<1x8x8x32xf32>
    %87 = vector.shape_cast %86 : vector<1x8x8x32xf32> to vector<8x8x32xf32>
    %88 = vector.shape_cast %87 : vector<8x8x32xf32> to vector<64x32xf32>
    %c10 = arith.constant 10 : index
    %c0_88 = arith.constant 0 : index
    %c0_89 = arith.constant 0 : index
    %89 = vector.load %arg2[%c10, %c0_88, %c0_89] : memref<16x32x16xf32, #tpu.memory_space<vmem>>, vector<1x32x16xf32>
    %90 = vector.shape_cast %89 : vector<1x32x16xf32> to vector<32x16xf32>
    %cst_90 = arith.constant dense<0.000000e+00> : vector<64x16xf32>
    %91 = tpu.matmul %88, %90, %cst_90 {dimension_numbers = #tpu.dot_dimension_numbers<[1], [0], [0], [1], [0, 0, 1, 1], [], []>} : vector<64x32xf32>, vector<32x16xf32>, vector<64x16xf32> -> vector<64x16xf32>
    %92 = arith.addf %85, %91 : vector<64x16xf32>
    %c0_91 = arith.constant 0 : index
    %c2_92 = arith.constant 2 : index
    %c1_93 = arith.constant 1 : index
    %c0_94 = arith.constant 0 : index
    %93 = vector.load %arg1[%c0_91, %c2_92, %c1_93, %c0_94] : memref<1x10x10x32xf32, #tpu.memory_space<vmem>>, vector<1x8x8x32xf32>
    %94 = vector.shape_cast %93 : vector<1x8x8x32xf32> to vector<8x8x32xf32>
    %95 = vector.shape_cast %94 : vector<8x8x32xf32> to vector<64x32xf32>
    %c11 = arith.constant 11 : index
    %c0_95 = arith.constant 0 : index
    %c0_96 = arith.constant 0 : index
    %96 = vector.load %arg2[%c11, %c0_95, %c0_96] : memref<16x32x16xf32, #tpu.memory_space<vmem>>, vector<1x32x16xf32>
    %97 = vector.shape_cast %96 : vector<1x32x16xf32> to vector<32x16xf32>
    %cst_97 = arith.constant dense<0.000000e+00> : vector<64x16xf32>
    %98 = tpu.matmul %95, %97, %cst_97 {dimension_numbers = #tpu.dot_dimension_numbers<[1], [0], [0], [1], [0, 0, 1, 1], [], []>} : vector<64x32xf32>, vector<32x16xf32>, vector<64x16xf32> -> vector<64x16xf32>
    %99 = arith.addf %92, %98 : vector<64x16xf32>
    %100 = vector.broadcast %0 : vector<1x16xf32> to vector<64x16xf32>
    %101 = arith.addf %99, %100 : vector<64x16xf32>
    %102 = vector.shape_cast %101 : vector<64x16xf32> to vector<8x8x16xf32>
    %c0_98 = arith.constant 0 : index
    %c2_99 = arith.constant 2 : index
    %c0_100 = arith.constant 0 : index
    %c0_101 = arith.constant 0 : index
    %c0_102 = arith.constant 0 : index
    %103 = vector.load %arg4[%c0_98, %c2_99, %c0_100, %c0_101, %c0_102] : memref<1x4x8x8x16xf32, #tpu.memory_space<vmem>>, vector<1x1x8x8x16xf32>
    %104 = vector.shape_cast %103 : vector<1x1x8x8x16xf32> to vector<8x8x16xf32>
    %105 = vector.shape_cast %102 : vector<8x8x16xf32> to vector<1x1x8x8x16xf32>
    tpu.vector_store %arg4[%c0_98, %c2_99, %c0_100, %c0_101, %c0_102], %105 {strides = array<i32>} : memref<1x4x8x8x16xf32, #tpu.memory_space<vmem>>, vector<1x1x8x8x16xf32>,
    %cst_103 = arith.constant 0.000000e+00 : f32
    %106 = vector.broadcast %cst_103 : f32 to vector<64x16xf32>
    %c0_104 = arith.constant 0 : index
    %c1_105 = arith.constant 1 : index
    %c1_106 = arith.constant 1 : index
    %c0_107 = arith.constant 0 : index
    %107 = vector.load %arg1[%c0_104, %c1_105, %c1_106, %c0_107] : memref<1x10x10x32xf32, #tpu.memory_space<vmem>>, vector<1x8x8x32xf32>
    %108 = vector.shape_cast %107 : vector<1x8x8x32xf32> to vector<8x8x32xf32>
    %109 = vector.shape_cast %108 : vector<8x8x32xf32> to vector<64x32xf32>
    %c12 = arith.constant 12 : index
    %c0_108 = arith.constant 0 : index
    %c0_109 = arith.constant 0 : index
    %110 = vector.load %arg2[%c12, %c0_108, %c0_109] : memref<16x32x16xf32, #tpu.memory_space<vmem>>, vector<1x32x16xf32>
    %111 = vector.shape_cast %110 : vector<1x32x16xf32> to vector<32x16xf32>
    %cst_110 = arith.constant dense<0.000000e+00> : vector<64x16xf32>
    %112 = tpu.matmul %109, %111, %cst_110 {dimension_numbers = #tpu.dot_dimension_numbers<[1], [0], [0], [1], [0, 0, 1, 1], [], []>} : vector<64x32xf32>, vector<32x16xf32>, vector<64x16xf32> -> vector<64x16xf32>
    %113 = arith.addf %106, %112 : vector<64x16xf32>
    %c0_111 = arith.constant 0 : index
    %c1_112 = arith.constant 1 : index
    %c2_113 = arith.constant 2 : index
    %c0_114 = arith.constant 0 : index
    %114 = vector.load %arg1[%c0_111, %c1_112, %c2_113, %c0_114] : memref<1x10x10x32xf32, #tpu.memory_space<vmem>>, vector<1x8x8x32xf32>
    %115 = vector.shape_cast %114 : vector<1x8x8x32xf32> to vector<8x8x32xf32>
    %116 = vector.shape_cast %115 : vector<8x8x32xf32> to vector<64x32xf32>
    %c13 = arith.constant 13 : index
    %c0_115 = arith.constant 0 : index
    %c0_116 = arith.constant 0 : index
    %117 = vector.load %arg2[%c13, %c0_115, %c0_116] : memref<16x32x16xf32, #tpu.memory_space<vmem>>, vector<1x32x16xf32>
    %118 = vector.shape_cast %117 : vector<1x32x16xf32> to vector<32x16xf32>
    %cst_117 = arith.constant dense<0.000000e+00> : vector<64x16xf32>
    %119 = tpu.matmul %116, %118, %cst_117 {dimension_numbers = #tpu.dot_dimension_numbers<[1], [0], [0], [1], [0, 0, 1, 1], [], []>} : vector<64x32xf32>, vector<32x16xf32>, vector<64x16xf32> -> vector<64x16xf32>
    %120 = arith.addf %113, %119 : vector<64x16xf32>
    %c0_118 = arith.constant 0 : index
    %c2_119 = arith.constant 2 : index
    %c1_120 = arith.constant 1 : index
    %c0_121 = arith.constant 0 : index
    %121 = vector.load %arg1[%c0_118, %c2_119, %c1_120, %c0_121] : memref<1x10x10x32xf32, #tpu.memory_space<vmem>>, vector<1x8x8x32xf32>
    %122 = vector.shape_cast %121 : vector<1x8x8x32xf32> to vector<8x8x32xf32>
    %123 = vector.shape_cast %122 : vector<8x8x32xf32> to vector<64x32xf32>
    %c14 = arith.constant 14 : index
    %c0_122 = arith.constant 0 : index
    %c0_123 = arith.constant 0 : index
    %124 = vector.load %arg2[%c14, %c0_122, %c0_123] : memref<16x32x16xf32, #tpu.memory_space<vmem>>, vector<1x32x16xf32>
    %125 = vector.shape_cast %124 : vector<1x32x16xf32> to vector<32x16xf32>
    %cst_124 = arith.constant dense<0.000000e+00> : vector<64x16xf32>
    %126 = tpu.matmul %123, %125, %cst_124 {dimension_numbers = #tpu.dot_dimension_numbers<[1], [0], [0], [1], [0, 0, 1, 1], [], []>} : vector<64x32xf32>, vector<32x16xf32>, vector<64x16xf32> -> vector<64x16xf32>
    %127 = arith.addf %120, %126 : vector<64x16xf32>
    %c0_125 = arith.constant 0 : index
    %c2_126 = arith.constant 2 : index
    %c2_127 = arith.constant 2 : index
    %c0_128 = arith.constant 0 : index
    %128 = vector.load %arg1[%c0_125, %c2_126, %c2_127, %c0_128] : memref<1x10x10x32xf32, #tpu.memory_space<vmem>>, vector<1x8x8x32xf32>
    %129 = vector.shape_cast %128 : vector<1x8x8x32xf32> to vector<8x8x32xf32>
    %130 = vector.shape_cast %129 : vector<8x8x32xf32> to vector<64x32xf32>
    %c15 = arith.constant 15 : index
    %c0_129 = arith.constant 0 : index
    %c0_130 = arith.constant 0 : index
    %131 = vector.load %arg2[%c15, %c0_129, %c0_130] : memref<16x32x16xf32, #tpu.memory_space<vmem>>, vector<1x32x16xf32>
    %132 = vector.shape_cast %131 : vector<1x32x16xf32> to vector<32x16xf32>
    %cst_131 = arith.constant dense<0.000000e+00> : vector<64x16xf32>
    %133 = tpu.matmul %130, %132, %cst_131 {dimension_numbers = #tpu.dot_dimension_numbers<[1], [0], [0], [1], [0, 0, 1, 1], [], []>} : vector<64x32xf32>, vector<32x16xf32>, vector<64x16xf32> -> vector<64x16xf32>
    %134 = arith.addf %127, %133 : vector<64x16xf32>
    %135 = vector.broadcast %0 : vector<1x16xf32> to vector<64x16xf32>
    %136 = arith.addf %134, %135 : vector<64x16xf32>
    %137 = vector.shape_cast %136 : vector<64x16xf32> to vector<8x8x16xf32>
    %c0_132 = arith.constant 0 : index
    %c3_133 = arith.constant 3 : index
    %c0_134 = arith.constant 0 : index
    %c0_135 = arith.constant 0 : index
    %c0_136 = arith.constant 0 : index
    %138 = vector.load %arg4[%c0_132, %c3_133, %c0_134, %c0_135, %c0_136] : memref<1x4x8x8x16xf32, #tpu.memory_space<vmem>>, vector<1x1x8x8x16xf32>
    %139 = vector.shape_cast %138 : vector<1x1x8x8x16xf32> to vector<8x8x16xf32>
    %140 = vector.shape_cast %137 : vector<8x8x16xf32> to vector<1x1x8x8x16xf32>
    tpu.vector_store %arg4[%c0_132, %c3_133, %c0_134, %c0_135, %c0_136], %140 {strides = array<i32>} : memref<1x4x8x8x16xf32, #tpu.memory_space<vmem>>, vector<1x1x8x8x16xf32>,
    return
  }
  func.func @transform_0(%arg0: i32) -> (i32, i32, i32, i32) {
    %c0_i32 = arith.constant 0 : i32
    %c0_i32_0 = arith.constant 0 : i32
    %c0_i32_1 = arith.constant 0 : i32
    %c0_i32_2 = arith.constant 0 : i32
    return %arg0, %c0_i32, %c0_i32_0, %c0_i32_1 : i32, i32, i32, i32
  }
  func.func @transform_1(%arg0: i32) -> (i32, i32, i32) {
    %c0_i32 = arith.constant 0 : i32
    %c0_i32_0 = arith.constant 0 : i32
    %c0_i32_1 = arith.constant 0 : i32
    %c0_i32_2 = arith.constant 0 : i32
    return %c0_i32, %c0_i32_0, %c0_i32_1 : i32, i32, i32
  }
  func.func @transform_2(%arg0: i32) -> (i32, i32) {
    %c0_i32 = arith.constant 0 : i32
    %c0_i32_0 = arith.constant 0 : i32
    %c0_i32_1 = arith.constant 0 : i32
    return %c0_i32, %c0_i32_0 : i32, i32
  }
  func.func @transform_3(%arg0: i32) -> (i32, i32, i32, i32, i32) {
    %c0_i32 = arith.constant 0 : i32
    %c0_i32_0 = arith.constant 0 : i32
    %c0_i32_1 = arith.constant 0 : i32
    %c0_i32_2 = arith.constant 0 : i32
    %c0_i32_3 = arith.constant 0 : i32
    return %arg0, %c0_i32, %c0_i32_0, %c0_i32_1, %c0_i32_2 : i32, i32, i32, i32, i32
  }
}

</mosaic_0001>

<bundles_post_ra>
// kernel: up_forward.1
= control target key start
LH: loop header
LB: loop body
LE: loop exit
PB: predicated region body
PF: predicated region fallthrough
CT: control target
= control target key end

     0   :  { %s3732_s12 = smov 0   ;;  %s4376_s0 = inlined_call_operand.vmem [shape: f32[2,10,10,32], index: 0, kind: input, shape index: {}]   ;;  %s4377_s1 = inlined_call_operand.vmem [shape: f32[16,32,16], index: 1, kind: input, shape index: {}]   ;;  %s4378_s2 = inlined_call_operand.vmem [shape: f32[1,16], index: 2, kind: input, shape index: {}]   ;;  %s4379_s3 = inlined_call_operand.vmem [shape: f32[2,4,8,8,16], index: 3, kind: output, shape index: {}]  }
   0x1 LB: > { %s2639_s13 = sadd.s32 4294967295, %s3710_s12   ;;  %p2643_p0 = scmp.ge.s32.totalorder %s3710_s12, 1  ;;  %s3710_s12 = sphi %s3732_s12, %s13_s12  }
   0x2   : > { %p137_p1 = scmp.lt.s32.totalorder %s3710_s12, 3 }
   0x4   : > { %p138_p2 = pnand %p2643_p0, %p137_p1 }
   0x5   : > { %v2647_v0 = vld [vmem:[%s4377_s1 + $0x20] sm:$0xff] (!%p138_p2)  ;;  %v2648_v1 = vld [vmem:[%s4377_s1 + $0x28] sm:$0xff] (!%p138_p2)  ;;  %p161_p3 = scmp.lt.s32.totalorder (!%p138_p2), %s2639_s13, 1  ;;  %v2649_v5 = vld [vmem:[%s4377_s1 + $0x30] sm:$0xff] (!%p138_p2)  ;;  %vm197_vm0 = vcmask (!%p138_p2), 261120   ;;  %vm771_vm1 = vcmask (!%p138_p2), 130048  }
   0x6   : > { %141 = sbr.rel (%p138_p2) target bundleno = 360 (0x168), region = 32  ;;  %v2712_v2 = vld [vmem:[%s4377_s1 + $0xa0] sm:$0xff] (!%p138_p2)  ;;  %v3471_v3 = vpack.c.bf16 (!%p138_p2), %v2648_v1, %v2647_v0  ;;  %v2713_v4 = vld [vmem:[%s4377_s1 + $0xa8] sm:$0xff] (!%p138_p2)  ;;  %v2650_v6 = vld [vmem:[%s4377_s1 + $0x38] sm:$0xff] (!%p138_p2) }
   0x7   : > { %v3503_v7 = vpack.c.bf16 (!%p138_p2), %v2713_v4, %v2712_v2  ;;  %v3475_v8 = vpack.c.bf16 (!%p138_p2), %v2650_v6, %v2649_v5  ;;  %v2714_v9 = vld [vmem:[%s4377_s1 + $0xb0] sm:$0xff] (!%p138_p2)  ;;  %v2715_v10 = vld [vmem:[%s4377_s1 + $0xb8] sm:$0xff] (!%p138_p2)  ;;  %v180_v11 = vld [vmem:[%s4377_s1] sm:$0xff] (!%p138_p2) }
   0x8   : > { %3472 = vmatprep.subr.bf16.mxu0 (!%p138_p2), %v3471_v3  ;;  %v3507_v12 = vpack.c.bf16 (!%p138_p2), %v2715_v10, %v2714_v9  ;;  %v181_v13 = vld [vmem:[%s4377_s1 + $0x8] sm:$0xff] (!%p138_p2)  ;;  %v2708_v14 = vld [vmem:[%s4377_s1 + $0x80] sm:$0xff] (!%p138_p2)  ;;  %v182_v18 = vld [vmem:[%s4377_s1 + $0x10] sm:$0xff] (!%p138_p2) }
   0x9   : > { %v2709_v15 = vld [vmem:[%s4377_s1 + $0x88] sm:$0xff] (!%p138_p2)  ;;  %3504 = vmatprep.subr.bf16.mxu1 (!%p138_p2), %v3503_v7  ;;  %3474 = vmatpush3.bf16.msra.mxu0 (!%p138_p2), %v3471_v3  ;;  %v3479_v16 = vpack.c.bf16 (!%p138_p2), %v181_v13, %v180_v11  ;;  %v183_v21 = vld [vmem:[%s4377_s1 + $0x18] sm:$0xff] (!%p138_p2)  ;;  %v2710_v23 = vld [vmem:[%s4377_s1 + $0x90] sm:$0xff] (!%p138_p2) }
   0xa   : > { %3506 = vmatpush3.bf16.msra.mxu1 (!%p138_p2), %v3503_v7  ;;  %3476 = vmatprep.subr.bf16.mxu0 (!%p138_p2), %v3475_v8  ;;  %v3511_v17 = vpack.c.bf16 (!%p138_p2), %v2709_v15, %v2708_v14  ;;  %v2711_v24 = vld [vmem:[%s4377_s1 + $0x98] sm:$0xff] (!%p138_p2)  ;;  %v3483_v27 = vpack.c.bf16 (!%p138_p2), %v183_v21, %v182_v18  ;;  %v2675_v30 = vld [vmem:[%s4377_s1 + $0x40] sm:$0xff] (!%p138_p2)  ;;  %v2676_v31 = vld [vmem:[%s4377_s1 + $0x48] sm:$0xff] (!%p138_p2) }
   0xb   : > { %3508 = vmatprep.subr.bf16.mxu1 (!%p138_p2), %v3507_v12  ;;  %v3515_v29 = vpack.c.bf16 (!%p138_p2), %v2711_v24, %v2710_v23  ;;  %v2740_v33 = vld [vmem:[%s4377_s1 + $0xc0] sm:$0xff] (!%p138_p2)  ;;  %v2741_v34 = vld [vmem:[%s4377_s1 + $0xc8] sm:$0xff] (!%p138_p2)  ;;  %v3487_v38 = vpack.c.bf16 (!%p138_p2), %v2676_v31, %v2675_v30  ;;  %v2677_v47 = vld [vmem:[%s4377_s1 + $0x50] sm:$0xff] (!%p138_p2) }
   0xc   : > { %v3519_v39 = vpack.c.bf16 (!%p138_p2), %v2741_v34, %v2740_v33  ;;  %v2678_v48 = vld [vmem:[%s4377_s1 + $0x58] sm:$0xff] (!%p138_p2)  ;;  %v2742_v50 = vld [vmem:[%s4377_s1 + $0xd0] sm:$0xff] (!%p138_p2)  ;;  %v2695_v55 = vld [vmem:[%s4377_s1 + $0x60] sm:$0xff] (!%p138_p2) }
   0xd   : > { %s4381_s13 = smov (!%p161_p3, %s2639_s13), 1  ;;  %3478 = vmatpush3.bf16.msra.mxu0 %v3475_v8  ;;  %v2743_v51 = vld [vmem:[%s4377_s1 + $0xd8] sm:$0xff]  ;;  %v3491_v53 = vpack.c.bf16 %v2678_v48, %v2677_v47  ;;  %v2696_v56 = vld [vmem:[%s4377_s1 + $0x68] sm:$0xff]  ;;  %v2760_v58 = vld [vmem:[%s4377_s1 + $0xe0] sm:$0xff] }
   0xe   : > { %s3695_s11 = smul.u32 160, %s4381_s13  ;;  %3510 = vmatpush3.bf16.msra.mxu1 %v3507_v12  ;;  %3480 = vmatprep.subr.bf16.mxu0 %v3479_v16  ;;  %v3523_v54 = vpack.c.bf16 %v2743_v51, %v2742_v50  ;;  %v2761_v59 = vld [vmem:[%s4377_s1 + $0xe8] sm:$0xff]  ;;  %v3495_v61 = vpack.c.bf16 %v2696_v56, %v2695_v55  ;;  %v2697_v2 = vld [vmem:[%s4377_s1 + $0x70] sm:$0xff]  ;;  %v2698_v3 = vld [vmem:[%s4377_s1 + $0x78] sm:$0xff]  ;;  %s2958_s25 = sshll.u32 %s4381_s13, 8 }
   0xf   : > { %3512 = vmatprep.subr.bf16.mxu1 %v3511_v17  ;;  %v3527_v62 = vpack.c.bf16 %v2761_v59, %v2760_v58  ;;  %v2762_v4 = vld [vmem:[%s4377_s1 + $0xf0] sm:$0xff]  ;;  %v2763_v5 = vld [vmem:[%s4377_s1 + $0xf8] sm:$0xff]  ;;  %v3499_v6 = vpack.c.bf16 %v2698_v3, %v2697_v2  ;;  %v2800_v8 = vld [vmem:[%s4377_s1 + $0x120] sm:$0xff]  ;;  %s4275_s30 = scalar_lea.vmem %s4379_s3, %s2958_s25 }
  0x10   : > { %s3782_s16 = scalar_lea.vmem %s4376_s0, %s3695_s11  ;;  %v3531_v7 = vpack.c.bf16 %v2763_v5, %v2762_v4  ;;  %v2801_v9 = vld [vmem:[%s4377_s1 + $0x128] sm:$0xff]  ;;  %v2888_v10 = vld [vmem:[%s4377_s1 + $0x1a0] sm:$0xff]  ;;  %v2890_v18 = vld [vmem:[%s4377_s1 + $0x1b0] sm:$0xff] }
  0x11   : > { %v184_v19 = vld [vmem:[%s3782_s16 + $0x1] sm:$0xff]  ;;  %v3794_v22 = vld [vmem:[%s3782_s16 + $0x11] sm:$0xff]  ;;  %v3535_v12 = vpack.c.bf16 %v2801_v9, %v2800_v8 }
  0x12   : > { %v793_v20 = vld [vmem:[%s3782_s16 + $0x2] sm:$0xff]  ;;  %3159 = vmatprep.mubr.msk.f32.mxu0 %vm197_vm0, %v184_v19  ;;  %v3804_v25 = vld [vmem:[%s3782_s16 + $0x12] sm:$0xff] }
  0x13   : > { %3239 = vmatprep.mubr.msk.f32.mxu1 %vm197_vm0, %v793_v20  ;;  %v3807_v26 = vld [vmem:[%s3782_s16 + $0x21] sm:$0xff]  ;;  %3160 = vmatmul.mubr.msk.f32.vlgmr.msra.gmra.mrb[0].mxu0 %vm197_vm0, %v3794_v22  ;;  %v3823_v32 = vld [vmem:[%s3782_s16 + $0x31] sm:$0xff] }
  0x14   : > { %v3812_v28 = vld [vmem:[%s3782_s16 + $0x22] sm:$0xff]  ;;  %3240 = vmatmul.mubr.msk.f32.vlgmr.msra.gmra.mrb[0].mxu1 %vm197_vm0, %v3804_v25  ;;  %3482 = vmatpush3.bf16.msra.mxu0 %v3479_v16  ;;  %v3834_v35 = vld [vmem:[%s3782_s16 + $0x32] sm:$0xff] }
  0x15   : > { %3514 = vmatpush3.bf16.msra.mxu1 %v3511_v17  ;;  %3162 = vmatprep.mubr.msk.f32.mxu0 %vm197_vm0, %v3807_v26  ;;  %v3837_v36 = vld [vmem:[%s3782_s16 + $0x41] sm:$0xff]  ;;  %v3851_v40 = vld [vmem:[%s3782_s16 + $0x51] sm:$0xff] }
  0x16   : > { %3242 = vmatprep.mubr.msk.f32.mxu1 %vm197_vm0, %v3812_v28  ;;  %v3842_v37 = vld [vmem:[%s3782_s16 + $0x42] sm:$0xff]  ;;  %3484 = vmatprep.subr.bf16.mxu0 %v3483_v27  ;;  %v3856_v41 = vld [vmem:[%s3782_s16 + $0x52] sm:$0xff] }
  0x17   : > { %3163 = vmatmul.mubr.msk.f32.gmra.mrb[2].mxu0 %vm197_vm0, %v3823_v32  ;;  %3516 = vmatprep.subr.bf16.mxu1 %v3515_v29  ;;  %v3859_v42 = vld [vmem:[%s3782_s16 + $0x61] sm:$0xff]  ;;  %v3871_v44 = vld [vmem:[%s3782_s16 + $0x71] sm:$0xff] }
  0x18   : > { %3243 = vmatmul.mubr.msk.f32.gmra.mrb[2].mxu1 %vm197_vm0, %v3834_v35  ;;  %3165 = vmatprep.mubr.msk.f32.mxu0 %vm197_vm0, %v3837_v36  ;;  %v3862_v43 = vld [vmem:[%s3782_s16 + $0x62] sm:$0xff]  ;;  %v3876_v45 = vld [vmem:[%s3782_s16 + $0x72] sm:$0xff] }
  0x19   : > { %3245 = vmatprep.mubr.msk.f32.mxu1 %vm197_vm0, %v3842_v37  ;;  %3486 = vmatpush3.bf16.msra.mxu0 %v3483_v27  ;;  %v172_v46 = vld [vmem:[%s3782_s16] sm:$0xff]  ;;  %v3891_v49 = vld [vmem:[%s3782_s16 + $0x10] sm:$0xff]  ;;  %v2889_v11 = vld [vmem:[%s4377_s1 + $0x1a8] sm:$0xff] }
  0x1a   : > { %3518 = vmatpush3.bf16.msra.mxu1 %v3515_v29  ;;  %3488 = vmatprep.subr.bf16.mxu0 %v3487_v38  ;;  %v3901_v52 = vld [vmem:[%s3782_s16 + $0x20] sm:$0xff]  ;;  %v3914_v57 = vld [vmem:[%s3782_s16 + $0x30] sm:$0xff]  ;;  %v3567_v13 = vpack.c.bf16 %v2889_v11, %v2888_v10  ;;  %v2803_v17 = vld [vmem:[%s4377_s1 + $0x138] sm:$0xff] }
  0x1b   : > { %3166 = vmatmul.mubr.msk.f32.gmra.mrb[4].mxu0 %vm197_vm0, %v3851_v40  ;;  %3520 = vmatprep.subr.bf16.mxu1 %v3519_v39  ;;  %v3925_v60 = vld [vmem:[%s3782_s16 + $0x40] sm:$0xff]  ;;  %v3936_v63 = vld [vmem:[%s3782_s16 + $0x50] sm:$0xff]  ;;  %v2789_v24 = vld [vmem:[%s4377_s1 + $0x108] sm:$0xff] }
  0x1c   : > { %3246 = vmatmul.mubr.msk.f32.gmra.mrb[4].mxu1 %vm197_vm0, %v3856_v41  ;;  %3168 = vmatprep.mubr.msk.f32.mxu0 %vm197_vm0, %v3859_v42  ;;  %v3941_v0 = vld [vmem:[%s3782_s16 + $0x60] sm:$0xff]  ;;  %v3950_v1 = vld [vmem:[%s3782_s16 + $0x70] sm:$0xff]  ;;  %v2877_v29 = vld [vmem:[%s4377_s1 + $0x188] sm:$0xff] }
  0x1d   : > { %3248 = vmatprep.mubr.msk.f32.mxu1 %vm197_vm0, %v3862_v43  ;;  %v4009_v14 = vld [vmem:[%s3782_s16 + $0x80] sm:$0xff]  ;;  %v2802_v16 = vld [vmem:[%s4377_s1 + $0x130] sm:$0xff]  ;;  %v2829_v51 = vld [vmem:[%s4377_s1 + $0x148] sm:$0xff] }
  0x1e   : > { %v4014_v15 = vld [vmem:[%s3782_s16 + $0x81] sm:$0xff]  ;;  %v3539_v20 = vpack.c.bf16 %v2803_v17, %v2802_v16  ;;  %v2790_v34 = vld [vmem:[%s4377_s1 + $0x110] sm:$0xff]  ;;  %v2831_v58 = vld [vmem:[%s4377_s1 + $0x158] sm:$0xff] }
  0x1f   : > { %3169 = vmatmul.mubr.msk.f32.gmra.mrb[6].mxu0 %vm197_vm0, %v3871_v44  ;;  %v2788_v23 = vld [vmem:[%s4377_s1 + $0x100] sm:$0xff]  ;;  %v2830_v56 = vld [vmem:[%s4377_s1 + $0x150] sm:$0xff]  ;;  %v2849_v3 = vld [vmem:[%s4377_s1 + $0x168] sm:$0xff] }
  0x20   : > { %3249 = vmatmul.mubr.msk.f32.gmra.mrb[6].mxu1 %vm197_vm0, %v3876_v45  ;;  %3179 = vmatprep.mubr.msk.f32.mxu0 %vm197_vm0, %v172_v46  ;;  %v2876_v27 = vld [vmem:[%s4377_s1 + $0x180] sm:$0xff]  ;;  %v3543_v30 = vpack.c.bf16 %v2789_v24, %v2788_v23  ;;  %v2879_v46 = vld [vmem:[%s4377_s1 + $0x198] sm:$0xff]  ;;  %v2918_v59 = vld [vmem:[%s4377_s1 + $0x1d0] sm:$0xff] }
  0x21   : > { %3259 = vmatprep.mubr.msk.f32.mxu1 %vm197_vm0, %v184_v19  ;;  %v2891_v19 = vld [vmem:[%s4377_s1 + $0x1b8] sm:$0xff]  ;;  %v3575_v31 = vpack.c.bf16 %v2877_v29, %v2876_v27  ;;  %v4073_v33 = vld [vmem:[%s3782_s16 + $0x82] sm:$0xff]  ;;  %v2938_v9 = vld [vmem:[%s4377_s1 + $0x1f0] sm:$0xff] }
  0x22   : > { %v3571_v21 = vpack.c.bf16 %v2891_v19, %v2890_v18  ;;  %v2828_v50 = vld [vmem:[%s4377_s1 + $0x140] sm:$0xff]  ;;  %v2937_v4 = vld [vmem:[%s4377_s1 + $0x1e8] sm:$0xff]  ;;  %v2851_v8 = vld [vmem:[%s4377_s1 + $0x178] sm:$0xff] }
  0x23   : > { %3180 = vmatmul.mubr.msk.f32.vlgmr.msra.gmra.mrb[0].mxu0 %vm197_vm0, %v3891_v49  ;;  %v2939_v10 = vld [vmem:[%s4377_s1 + $0x1f8] sm:$0xff] }
  0x24   : > { %3260 = vmatmul.mubr.msk.f32.vlgmr.msra.gmra.mrb[0].mxu1 %vm197_vm0, %v3794_v22  ;;  %3490 = vmatpush3.bf16.msra.mxu0 %v3487_v38  ;;  %v2791_v38 = vld [vmem:[%s4377_s1 + $0x118] sm:$0xff] }
  0x25   : > { %3522 = vmatpush3.bf16.msra.mxu1 %v3519_v39  ;;  %3182 = vmatprep.mubr.msk.f32.mxu0 %vm197_vm0, %v3901_v52  ;;  %v2878_v39 = vld [vmem:[%s4377_s1 + $0x190] sm:$0xff]  ;;  %v3547_v47 = vpack.c.bf16 %v2791_v38, %v2790_v34 }
  0x26   : > { %3262 = vmatprep.mubr.msk.f32.mxu1 %vm197_vm0, %v3807_v26  ;;  %3492 = vmatprep.subr.bf16.mxu0 %v3491_v53  ;;  %v3579_v48 = vpack.c.bf16 %v2879_v46, %v2878_v39 }
  0x27   : > { %3183 = vmatmul.mubr.msk.f32.gmra.mrb[2].mxu0 %vm197_vm0, %v3914_v57  ;;  %3524 = vmatprep.subr.bf16.mxu1 %v3523_v54 }
  0x28   : > { %3263 = vmatmul.mubr.msk.f32.gmra.mrb[2].mxu1 %vm197_vm0, %v3823_v32  ;;  %3185 = vmatprep.mubr.msk.f32.mxu0 %vm197_vm0, %v3925_v60 }
  0x29   : > { %3265 = vmatprep.mubr.msk.f32.mxu1 %vm197_vm0, %v3837_v36  ;;  %3494 = vmatpush3.bf16.msra.mxu0 %v3491_v53  ;;  %v2917_v53 = vld [vmem:[%s4377_s1 + $0x1c8] sm:$0xff] }
  0x2a   : > { %3526 = vmatpush3.bf16.msra.mxu1 %v3523_v54  ;;  %3496 = vmatprep.subr.bf16.mxu0 %v3495_v61  ;;  %v3551_v54 = vpack.c.bf16 %v2829_v51, %v2828_v50 }
  0x2b   : > { %3186 = vmatmul.mubr.msk.f32.gmra.mrb[4].mxu0 %vm197_vm0, %v3936_v63  ;;  %3528 = vmatprep.subr.bf16.mxu1 %v3527_v62 }
  0x2c   : > { %3266 = vmatmul.mubr.msk.f32.gmra.mrb[4].mxu1 %vm197_vm0, %v3851_v40  ;;  %3188 = vmatprep.mubr.msk.f32.mxu0 %vm197_vm0, %v3941_v0 }
  0x2d   : > { %3268 = vmatprep.mubr.msk.f32.mxu1 %vm197_vm0, %v3859_v42 }
  0x2f   : > { %3189 = vmatmul.mubr.msk.f32.gmra.mrb[6].mxu0 %vm197_vm0, %v3950_v1 }
  0x30   : > { %3269 = vmatmul.mubr.msk.f32.gmra.mrb[6].mxu1 %vm197_vm0, %v3871_v44  ;;  %3199 = vmatprep.mubr.msk.f32.mxu0 %vm197_vm0, %v3891_v49 }
  0x31   : > { %3279 = vmatprep.mubr.msk.f32.mxu1 %vm197_vm0, %v3794_v22 }
  0x33   : > { %3200 = vmatmul.mubr.msk.f32.vlgmr.msra.gmra.mrb[0].mxu0 %vm197_vm0, %v3901_v52 }
  0x34   : > { %3280 = vmatmul.mubr.msk.f32.vlgmr.msra.gmra.mrb[0].mxu1 %vm197_vm0, %v3807_v26  ;;  %3498 = vmatpush3.bf16.msra.mxu0 %v3495_v61  ;;  %v2919_v61 = vld [vmem:[%s4377_s1 + $0x1d8] sm:$0xff] }
  0x35   : > { %3530 = vmatpush3.bf16.msra.mxu1 %v3527_v62  ;;  %3202 = vmatprep.mubr.msk.f32.mxu0 %vm197_vm0, %v3914_v57  ;;  %v3555_v62 = vpack.c.bf16 %v2831_v58, %v2830_v56  ;;  %v3587_v2 = vpack.c.bf16 %v2919_v61, %v2918_v59 }
  0x36   : > { %3282 = vmatprep.mubr.msk.f32.mxu1 %vm197_vm0, %v3823_v32  ;;  %3500 = vmatprep.subr.bf16.mxu0 %v3499_v6 }
  0x37   : > { %3203 = vmatmul.mubr.msk.f32.gmra.mrb[2].mxu0 %vm197_vm0, %v3925_v60  ;;  %3532 = vmatprep.subr.bf16.mxu1 %v3531_v7 }
  0x38   : > { %3283 = vmatmul.mubr.msk.f32.gmra.mrb[2].mxu1 %vm197_vm0, %v3837_v36  ;;  %3205 = vmatprep.mubr.msk.f32.mxu0 %vm197_vm0, %v3936_v63 }
  0x39   : > { %3285 = vmatprep.mubr.msk.f32.mxu1 %vm197_vm0, %v3851_v40  ;;  %3502 = vmatpush3.bf16.msra.mxu0 %v3499_v6 }
  0x3a   : > { %3534 = vmatpush3.bf16.msra.mxu1 %v3531_v7  ;;  %3536 = vmatprep.subr.bf16.mxu0 %v3535_v12  ;;  %v2850_v7 = vld [vmem:[%s4377_s1 + $0x170] sm:$0xff] }
  0x3b   : > { %3206 = vmatmul.mubr.msk.f32.gmra.mrb[4].mxu0 %vm197_vm0, %v3941_v0  ;;  %3568 = vmatprep.subr.bf16.mxu1 %v3567_v13  ;;  %v3563_v11 = vpack.c.bf16 %v2851_v8, %v2850_v7 }
  0x3c   : > { %3286 = vmatmul.mubr.msk.f32.gmra.mrb[4].mxu1 %vm197_vm0, %v3859_v42  ;;  %3208 = vmatprep.mubr.msk.f32.mxu0 %vm197_vm0, %v3950_v1 }
  0x3d   : > { %3288 = vmatprep.mubr.msk.f32.mxu1 %vm197_vm0, %v3871_v44 }
  0x3f   : > { %3209 = vmatmul.mubr.msk.f32.gmra.mrb[6].mxu0 %vm197_vm0, %v4009_v14 }
  0x40   : > { %3289 = vmatmul.mubr.msk.f32.gmra.mrb[6].mxu1 %vm197_vm0, %v4014_v15  ;;  %3219 = vmatprep.mubr.msk.f32.mxu0 %vm197_vm0, %v3794_v22 }
  0x41   : > { %3299 = vmatprep.mubr.msk.f32.mxu1 %vm197_vm0, %v3804_v25 }
  0x43   : > { %3220 = vmatmul.mubr.msk.f32.vlgmr.msra.gmra.mrb[0].mxu0 %vm197_vm0, %v3807_v26 }
  0x44   : > { %3300 = vmatmul.mubr.msk.f32.vlgmr.msra.gmra.mrb[0].mxu1 %vm197_vm0, %v3812_v28  ;;  %3538 = vmatpush3.bf16.msra.mxu0 %v3535_v12  ;;  %v3595_v12 = vpack.c.bf16 %v2939_v10, %v2938_v9 }
  0x45   : > { %3570 = vmatpush3.bf16.msra.mxu1 %v3567_v13  ;;  %3222 = vmatprep.mubr.msk.f32.mxu0 %vm197_vm0, %v3823_v32 }
  0x46   : > { %3302 = vmatprep.mubr.msk.f32.mxu1 %vm197_vm0, %v3834_v35  ;;  %3540 = vmatprep.subr.bf16.mxu0 %v3539_v20 }
  0x47   : > { %3223 = vmatmul.mubr.msk.f32.gmra.mrb[2].mxu0 %vm197_vm0, %v3837_v36  ;;  %3572 = vmatprep.subr.bf16.mxu1 %v3571_v21 }
  0x48   : > { %3303 = vmatmul.mubr.msk.f32.gmra.mrb[2].mxu1 %vm197_vm0, %v3842_v37  ;;  %3225 = vmatprep.mubr.msk.f32.mxu0 %vm197_vm0, %v3851_v40 }
  0x49   : > { %3305 = vmatprep.mubr.msk.f32.mxu1 %vm197_vm0, %v3856_v41  ;;  %3542 = vmatpush3.bf16.msra.mxu0 %v3539_v20 }
  0x4a   : > { %3574 = vmatpush3.bf16.msra.mxu1 %v3571_v21  ;;  %3544 = vmatprep.subr.bf16.mxu0 %v3543_v30 }
  0x4b   : > { %3226 = vmatmul.mubr.msk.f32.gmra.mrb[4].mxu0 %vm197_vm0, %v3859_v42  ;;  %3576 = vmatprep.subr.bf16.mxu1 %v3575_v31 }
  0x4c   : > { %3306 = vmatmul.mubr.msk.f32.gmra.mrb[4].mxu1 %vm197_vm0, %v3862_v43  ;;  %3228 = vmatprep.mubr.msk.f32.mxu0 %vm197_vm0, %v3871_v44 }
  0x4d   : > { %3308 = vmatprep.mubr.msk.f32.mxu1 %vm197_vm0, %v3876_v45 }
  0x4f   : > { %3229 = vmatmul.mubr.msk.f32.gmra.mrb[6].mxu0 %vm197_vm0, %v4014_v15 }
  0x50   : > { %3309 = vmatmul.mubr.msk.f32.gmra.mrb[6].mxu1 %vm197_vm0, %v4073_v33  ;;  %3319 = vmatprep.mubr.msk.f32.mxu0 %vm197_vm0, %v3794_v22 }
  0x51   : > { %3399 = vmatprep.mubr.msk.f32.mxu1 %vm197_vm0, %v3804_v25  ;;  %v2916_v25 = vld [vmem:[%s4377_s1 + $0x1c0] sm:$0xff] }
  0x52   : > { %v3583_v55 = vpack.c.bf16 %v2917_v53, %v2916_v25 }
  0x53   : > { %3320 = vmatmul.mubr.msk.f32.vlgmr.msra.gmra.mrb[8].mxu0 %vm197_vm0, %v3807_v26 }
  0x54   : > { %3400 = vmatmul.mubr.msk.f32.vlgmr.msra.gmra.mrb[8].mxu1 %vm197_vm0, %v3812_v28  ;;  %3546 = vmatpush3.bf16.msra.mxu0 %v3543_v30 }
  0x55   : > { %3578 = vmatpush3.bf16.msra.mxu1 %v3575_v31  ;;  %3322 = vmatprep.mubr.msk.f32.mxu0 %vm197_vm0, %v3823_v32 }
  0x56   : > { %3402 = vmatprep.mubr.msk.f32.mxu1 %vm197_vm0, %v3834_v35  ;;  %3548 = vmatprep.subr.bf16.mxu0 %v3547_v47 }
  0x57   : > { %3323 = vmatmul.mubr.msk.f32.gmra.mrb[10].mxu0 %vm197_vm0, %v3837_v36  ;;  %3580 = vmatprep.subr.bf16.mxu1 %v3579_v48 }
  0x58   : > { %3403 = vmatmul.mubr.msk.f32.gmra.mrb[10].mxu1 %vm197_vm0, %v3842_v37  ;;  %3325 = vmatprep.mubr.msk.f32.mxu0 %vm197_vm0, %v3851_v40 }
  0x59   : > { %3405 = vmatprep.mubr.msk.f32.mxu1 %vm197_vm0, %v3856_v41  ;;  %3550 = vmatpush3.bf16.msra.mxu0 %v3547_v47 }
  0x5a   : > { %3582 = vmatpush3.bf16.msra.mxu1 %v3579_v48  ;;  %3552 = vmatprep.subr.bf16.mxu0 %v3551_v54 }
  0x5b   : > { %3326 = vmatmul.mubr.msk.f32.gmra.mrb[12].mxu0 %vm197_vm0, %v3859_v42  ;;  %3584 = vmatprep.subr.bf16.mxu1 %v3583_v55 }
  0x5c   : > { %3406 = vmatmul.mubr.msk.f32.gmra.mrb[12].mxu1 %vm197_vm0, %v3862_v43  ;;  %3328 = vmatprep.mubr.msk.f32.mxu0 %vm197_vm0, %v3871_v44 }
  0x5d   : > { %3408 = vmatprep.mubr.msk.f32.mxu1 %vm197_vm0, %v3876_v45 }
  0x5f   : > { %3329 = vmatmul.mubr.msk.f32.gmra.mrb[14].mxu0 %vm197_vm0, %v4014_v15 }
  0x60   : > { %3409 = vmatmul.mubr.msk.f32.gmra.mrb[14].mxu1 %vm197_vm0, %v4073_v33  ;;  %3339 = vmatprep.mubr.msk.f32.mxu0 %vm197_vm0, %v3891_v49  ;;  %v2848_v49 = vld [vmem:[%s4377_s1 + $0x160] sm:$0xff] }
  0x61   : > { %3419 = vmatprep.mubr.msk.f32.mxu1 %vm197_vm0, %v3794_v22  ;;  %v2936_v22 = vld [vmem:[%s4377_s1 + $0x1e0] sm:$0xff]  ;;  %v3559_v5 = vpack.c.bf16 %v2849_v3, %v2848_v49 }
  0x62   : > { %v3591_v6 = vpack.c.bf16 %v2937_v4, %v2936_v22 }
  0x63   : > { %3340 = vmatmul.mubr.msk.f32.vlgmr.msra.gmra.mrb[8].mxu0 %vm197_vm0, %v3901_v52 }
  0x64   : > { %3420 = vmatmul.mubr.msk.f32.vlgmr.msra.gmra.mrb[8].mxu1 %vm197_vm0, %v3807_v26  ;;  %3554 = vmatpush3.bf16.msra.mxu0 %v3551_v54 }
  0x65   : > { %3586 = vmatpush3.bf16.msra.mxu1 %v3583_v55  ;;  %3342 = vmatprep.mubr.msk.f32.mxu0 %vm197_vm0, %v3914_v57 }
  0x66   : > { %3422 = vmatprep.mubr.msk.f32.mxu1 %vm197_vm0, %v3823_v32  ;;  %3556 = vmatprep.subr.bf16.mxu0 %v3555_v62 }
  0x67   : > { %3343 = vmatmul.mubr.msk.f32.gmra.mrb[10].mxu0 %vm197_vm0, %v3925_v60  ;;  %3588 = vmatprep.subr.bf16.mxu1 %v3587_v2 }
  0x68   : > { %3423 = vmatmul.mubr.msk.f32.gmra.mrb[10].mxu1 %vm197_vm0, %v3837_v36  ;;  %3345 = vmatprep.mubr.msk.f32.mxu0 %vm197_vm0, %v3936_v63 }
  0x69   : > { %3425 = vmatprep.mubr.msk.f32.mxu1 %vm197_vm0, %v3851_v40  ;;  %3558 = vmatpush3.bf16.msra.mxu0 %v3555_v62 }
  0x6a   : > { %3590 = vmatpush3.bf16.msra.mxu1 %v3587_v2  ;;  %3560 = vmatprep.subr.bf16.mxu0 %v3559_v5 }
  0x6b   : > { %3346 = vmatmul.mubr.msk.f32.gmra.mrb[12].mxu0 %vm197_vm0, %v3941_v0  ;;  %3592 = vmatprep.subr.bf16.mxu1 %v3591_v6 }
  0x6c   : > { %3426 = vmatmul.mubr.msk.f32.gmra.mrb[12].mxu1 %vm197_vm0, %v3859_v42  ;;  %3348 = vmatprep.mubr.msk.f32.mxu0 %vm197_vm0, %v3950_v1 }
  0x6d   : > { %3428 = vmatprep.mubr.msk.f32.mxu1 %vm197_vm0, %v3871_v44 }
  0x6f   : > { %3349 = vmatmul.mubr.msk.f32.gmra.mrb[14].mxu0 %vm197_vm0, %v4009_v14 }
  0x70   : > { %3429 = vmatmul.mubr.msk.f32.gmra.mrb[14].mxu1 %vm197_vm0, %v4014_v15  ;;  %3359 = vmatprep.mubr.msk.f32.mxu0 %vm197_vm0, %v3901_v52  ;;  %v2827_v52 = vld [vmem:[%s3782_s16 + $0x90] sm:$0xff] }
  0x71   : > { %3439 = vmatprep.mubr.msk.f32.mxu1 %vm197_vm0, %v3807_v26 }
  0x73   : > { %3360 = vmatmul.mubr.msk.f32.vlgmr.msra.gmra.mrb[8].mxu0 %vm197_vm0, %v3914_v57  ;;  %v2915_v57 = vld [vmem:[%s3782_s16 + $0x91] sm:$0xff] }
  0x74   : > { %3440 = vmatmul.mubr.msk.f32.vlgmr.msra.gmra.mrb[8].mxu1 %vm197_vm0, %v3823_v32  ;;  %3562 = vmatpush3.bf16.msra.mxu0 %v3559_v5 }
  0x75   : > { %3594 = vmatpush3.bf16.msra.mxu1 %v3591_v6  ;;  %3362 = vmatprep.mubr.msk.f32.mxu0 %vm197_vm0, %v3925_v60 }
  0x76   : > { %3442 = vmatprep.mubr.msk.f32.mxu1 %vm197_vm0, %v3837_v36  ;;  %3564 = vmatprep.subr.bf16.mxu0 %v3563_v11 }
  0x77   : > { %3363 = vmatmul.mubr.msk.f32.gmra.mrb[10].mxu0 %vm197_vm0, %v3936_v63  ;;  %3596 = vmatprep.subr.bf16.mxu1 %v3595_v12 }
  0x78   : > { %3443 = vmatmul.mubr.msk.f32.gmra.mrb[10].mxu1 %vm197_vm0, %v3851_v40  ;;  %3365 = vmatprep.mubr.msk.f32.mxu0 %vm197_vm0, %v3941_v0 }
  0x79   : > { %3445 = vmatprep.mubr.msk.f32.mxu1 %vm197_vm0, %v3859_v42  ;;  %3566 = vmatpush3.bf16.msra.mxu0 %v3563_v11 }
  0x7a   : > { %3598 = vmatpush3.bf16.msra.mxu1 %v3595_v12 }
  0x7b   : > { %3366 = vmatmul.mubr.msk.f32.gmra.mrb[12].mxu0 %vm197_vm0, %v3950_v1 }
  0x7c   : > { %3446 = vmatmul.mubr.msk.f32.gmra.mrb[12].mxu1 %vm197_vm0, %v3871_v44  ;;  %3368 = vmatprep.mubr.msk.f32.mxu0 %vm197_vm0, %v4009_v14 }
  0x7d   : > { %3448 = vmatprep.mubr.msk.f32.mxu1 %vm197_vm0, %v4014_v15 }
  0x7f   : > { %3369 = vmatmul.mubr.msk.f32.gmra.mrb[14].mxu0 %vm197_vm0, %v2827_v52 }
  0x80   : > { %3449 = vmatmul.mubr.msk.f32.gmra.mrb[14].mxu1 %vm197_vm0, %v2915_v57  ;;  %3379 = vmatprep.mubr.msk.f32.mxu0 %vm197_vm0, %v3807_v26  ;;  %v2935_v26 = vld [vmem:[%s3782_s16 + $0x92] sm:$0xff] }
  0x81   : > { %3459 = vmatprep.mubr.msk.f32.mxu1 %vm197_vm0, %v3812_v28  ;;  %v4270_v28 = vld [vmem:[%s4378_s2] ss:$0 sm:$0xff] }
  0x83   : > { %3380 = vmatmul.mubr.msk.f32.vlgmr.msra.gmra.mrb[8].mxu0 %vm197_vm0, %v3823_v32 }
  0x84   : > { %3460 = vmatmul.mubr.msk.f32.vlgmr.msra.gmra.mrb[8].mxu1 %vm197_vm0, %v3834_v35  ;;  %3382 = vmatprep.mubr.msk.f32.mxu0 %vm197_vm0, %v3837_v36 }
  0x85   : > { %3462 = vmatprep.mubr.msk.f32.mxu1 %vm197_vm0, %v3842_v37 }
  0x87   : > { %3383 = vmatmul.mubr.msk.f32.gmra.mrb[10].mxu0 %vm197_vm0, %v3851_v40 }
  0x88   : > { %3463 = vmatmul.mubr.msk.f32.gmra.mrb[10].mxu1 %vm197_vm0, %v3856_v41  ;;  %3385 = vmatprep.mubr.msk.f32.mxu0 %vm197_vm0, %v3859_v42 }
  0x89   : > { %3465 = vmatprep.mubr.msk.f32.mxu1 %vm197_vm0, %v3862_v43 }
  0x8b   : > { %3386 = vmatmul.mubr.msk.f32.gmra.mrb[12].mxu0 %vm197_vm0, %v3871_v44 }
  0x8c   : > { %3466 = vmatmul.mubr.msk.f32.gmra.mrb[12].mxu1 %vm197_vm0, %v3876_v45  ;;  %3388 = vmatprep.mubr.msk.f32.mxu0 %vm197_vm0, %v4014_v15 }
  0x8d   : > { %3468 = vmatprep.mubr.msk.f32.mxu1 %vm197_vm0, %v4073_v33 }
  0x8f   : > { %3389 = vmatmul.mubr.msk.f32.gmra.mrb[14].mxu0 %vm197_vm0, %v2915_v57 }
  0x90   : > { %3469 = vmatmul.mubr.msk.f32.gmra.mrb[14].mxu1 %vm197_vm0, %v2935_v26 }
 0x116   : > { %v3221_v32 = vpop.f32.mrb[0].mxu0 }
 0x117   : > { %v764_v35 = vadd.f32 %v3221_v32, %v4270_v28  ;;  %v3301_v36 = vpop.f32.mrb[0].mxu1  ;;  %v710_v37 = vpop.f32.mrb[1].mxu0 }
 0x118   : > { %v1365_v40 = vadd.f32 %v3301_v36, %v4270_v28  ;;  %v763_v41 = vadd.f32 %v4270_v28, %v710_v37  ;;  %v1317_v42 = vpop.f32.mrb[1].mxu1 }
 0x119   : > { %773 = vst.msk [vmem:[%s4275_s30 + $0x8] sm:$0xff] %vm771_vm1, %v764_v35  ;;  %v1364_v43 = vadd.f32 %v4270_v28, %v1317_v42 }
 0x11a   : > { %2773 = vst.msk [vmem:[%s4275_s30 + $0x48] sm:$0xff] %vm771_vm1, %v1365_v40  ;;  %772 = vst.msk [vmem:[%s4275_s30] sm:$0xff] %vm771_vm1, %v763_v41  ;;  %v3224_v44 = vpop.f32.mrb[2].mxu0 }
 0x11b   : > { %2772 = vst.msk [vmem:[%s4275_s30 + $0x40] sm:$0xff] %vm771_vm1, %v1364_v43  ;;  %v766_v45 = vadd.f32 %v3224_v44, %v4270_v28  ;;  %v3304_v60 = vpop.f32.mrb[2].mxu1  ;;  %v720_v63 = vpop.f32.mrb[3].mxu0 }
 0x11c   : > { %v1367_v0 = vadd.f32 %v3304_v60, %v4270_v28  ;;  %v765_v1 = vadd.f32 %v4270_v28, %v720_v63  ;;  %v1327_v13 = vpop.f32.mrb[3].mxu1 }
 0x11d   : > { %775 = vst.msk [vmem:[%s4275_s30 + $0x18] sm:$0xff] %vm771_vm1, %v766_v45  ;;  %v1366_v14 = vadd.f32 %v4270_v28, %v1327_v13 }
 0x11e   : > { %2775 = vst.msk [vmem:[%s4275_s30 + $0x58] sm:$0xff] %vm771_vm1, %v1367_v0  ;;  %774 = vst.msk [vmem:[%s4275_s30 + $0x10] sm:$0xff] %vm771_vm1, %v765_v1  ;;  %v3227_v15 = vpop.f32.mrb[4].mxu0 }
 0x11f   : > { %2774 = vst.msk [vmem:[%s4275_s30 + $0x50] sm:$0xff] %vm771_vm1, %v1366_v14  ;;  %v768_v16 = vadd.f32 %v3227_v15, %v4270_v28  ;;  %v3307_v17 = vpop.f32.mrb[4].mxu1  ;;  %v730_v18 = vpop.f32.mrb[5].mxu0 }
 0x120   : > { %v1369_v19 = vadd.f32 %v3307_v17, %v4270_v28  ;;  %v767_v20 = vadd.f32 %v4270_v28, %v730_v18  ;;  %v1337_v21 = vpop.f32.mrb[5].mxu1 }
 0x121   : > { %777 = vst.msk [vmem:[%s4275_s30 + $0x28] sm:$0xff] %vm771_vm1, %v768_v16  ;;  %v1368_v23 = vadd.f32 %v4270_v28, %v1337_v21 }
 0x122   : > { %2777 = vst.msk [vmem:[%s4275_s30 + $0x68] sm:$0xff] %vm771_vm1, %v1369_v19  ;;  %776 = vst.msk [vmem:[%s4275_s30 + $0x20] sm:$0xff] %vm771_vm1, %v767_v20  ;;  %v3230_v24 = vpop.f32.mrb[6].mxu0 }
 0x123   : > { %2776 = vst.msk [vmem:[%s4275_s30 + $0x60] sm:$0xff] %vm771_vm1, %v1368_v23  ;;  %v770_v27 = vadd.f32 %v3230_v24, %v4270_v28  ;;  %v3310_v29 = vpop.f32.mrb[6].mxu1  ;;  %v740_v30 = vpop.f32.mrb[7].mxu0 }
 0x124   : > { %v1371_v31 = vadd.f32 %v3310_v29, %v4270_v28  ;;  %v769_v33 = vadd.f32 %v4270_v28, %v740_v30  ;;  %v1347_v34 = vpop.f32.mrb[7].mxu1 }
 0x125   : > { %779 = vst.msk [vmem:[%s4275_s30 + $0x38] sm:$0xff] %vm771_vm1, %v770_v27  ;;  %v1370_v38 = vadd.f32 %v4270_v28, %v1347_v34 }
 0x126   : > { %2779 = vst.msk [vmem:[%s4275_s30 + $0x78] sm:$0xff] %vm771_vm1, %v1371_v31  ;;  %778 = vst.msk [vmem:[%s4275_s30 + $0x30] sm:$0xff] %vm771_vm1, %v769_v33 }
 0x127   : > { %2778 = vst.msk [vmem:[%s4275_s30 + $0x70] sm:$0xff] %vm771_vm1, %v1370_v38 }
 0x156   : > { %v3381_v39 = vpop.f32.mrb[8].mxu0 }
 0x157   : > { %v1967_v46 = vadd.f32 %v3381_v39, %v4270_v28  ;;  %v3461_v47 = vpop.f32.mrb[8].mxu1  ;;  %v1919_v48 = vpop.f32.mrb[9].mxu0 }
 0x158   : > { %v2568_v50 = vadd.f32 %v3461_v47, %v4270_v28  ;;  %v1966_v51 = vadd.f32 %v4270_v28, %v1919_v48  ;;  %v2520_v25 = vpop.f32.mrb[9].mxu1 }
 0x159   : > { %2861 = vst.msk [vmem:[%s4275_s30 + $0x88] sm:$0xff] %vm771_vm1, %v1967_v46  ;;  %v2567_v53 = vadd.f32 %v4270_v28, %v2520_v25 }
 0x15a   : > { %2949 = vst.msk [vmem:[%s4275_s30 + $0xc8] sm:$0xff] %vm771_vm1, %v2568_v50  ;;  %2860 = vst.msk [vmem:[%s4275_s30 + $0x80] sm:$0xff] %vm771_vm1, %v1966_v51  ;;  %v3384_v54 = vpop.f32.mrb[10].mxu0 }
 0x15b   : > { %2948 = vst.msk [vmem:[%s4275_s30 + $0xc0] sm:$0xff] %vm771_vm1, %v2567_v53  ;;  %v1969_v55 = vadd.f32 %v3384_v54, %v4270_v28  ;;  %v3464_v56 = vpop.f32.mrb[10].mxu1  ;;  %v1929_v58 = vpop.f32.mrb[11].mxu0 }
 0x15c   : > { %v2570_v59 = vadd.f32 %v3464_v56, %v4270_v28  ;;  %v1968_v61 = vadd.f32 %v4270_v28, %v1929_v58  ;;  %v2530_v62 = vpop.f32.mrb[11].mxu1 }
 0x15d   : > { %2863 = vst.msk [vmem:[%s4275_s30 + $0x98] sm:$0xff] %vm771_vm1, %v1969_v55  ;;  %v2569_v2 = vadd.f32 %v4270_v28, %v2530_v62 }
 0x15e   : > { %2951 = vst.msk [vmem:[%s4275_s30 + $0xd8] sm:$0xff] %vm771_vm1, %v2570_v59  ;;  %2862 = vst.msk [vmem:[%s4275_s30 + $0x90] sm:$0xff] %vm771_vm1, %v1968_v61  ;;  %v3387_v49 = vpop.f32.mrb[12].mxu0 }
 0x15f   : > { %2950 = vst.msk [vmem:[%s4275_s30 + $0xd0] sm:$0xff] %vm771_vm1, %v2569_v2  ;;  %v1971_v3 = vadd.f32 %v3387_v49, %v4270_v28  ;;  %v3467_v22 = vpop.f32.mrb[12].mxu1  ;;  %v1939_v4 = vpop.f32.mrb[13].mxu0 }
 0x160   : > { %v2572_v5 = vadd.f32 %v3467_v22, %v4270_v28  ;;  %v1970_v6 = vadd.f32 %v4270_v28, %v1939_v4  ;;  %v2540_v7 = vpop.f32.mrb[13].mxu1 }
 0x161   : > { %2865 = vst.msk [vmem:[%s4275_s30 + $0xa8] sm:$0xff] %vm771_vm1, %v1971_v3  ;;  %v2571_v8 = vadd.f32 %v4270_v28, %v2540_v7 }
 0x162   : > { %2953 = vst.msk [vmem:[%s4275_s30 + $0xe8] sm:$0xff] %vm771_vm1, %v2572_v5  ;;  %2864 = vst.msk [vmem:[%s4275_s30 + $0xa0] sm:$0xff] %vm771_vm1, %v1970_v6  ;;  %v3390_v9 = vpop.f32.mrb[14].mxu0 }
 0x163   : > { %2952 = vst.msk [vmem:[%s4275_s30 + $0xe0] sm:$0xff] %vm771_vm1, %v2571_v8  ;;  %v1973_v10 = vadd.f32 %v3390_v9, %v4270_v28  ;;  %v3470_v11 = vpop.f32.mrb[14].mxu1  ;;  %v1949_v12 = vpop.f32.mrb[15].mxu0 }
 0x164   : > { %v2574_v52 = vadd.f32 %v3470_v11, %v4270_v28  ;;  %v1972_v57 = vadd.f32 %v4270_v28, %v1949_v12  ;;  %v2550_v26 = vpop.f32.mrb[15].mxu1 }
 0x165   : > { %2867 = vst.msk [vmem:[%s4275_s30 + $0xb8] sm:$0xff] %vm771_vm1, %v1973_v10  ;;  %v2573_v32 = vadd.f32 %v4270_v28, %v2550_v26 }
 0x166   : > { %2955 = vst.msk [vmem:[%s4275_s30 + $0xf8] sm:$0xff] %vm771_vm1, %v2574_v52  ;;  %2866 = vst.msk [vmem:[%s4275_s30 + $0xb0] sm:$0xff] %vm771_vm1, %v1972_v57 }
 0x167   : > { %2954 = vst.msk [vmem:[%s4275_s30 + $0xf0] sm:$0xff] %vm771_vm1, %v2573_v32 }
 0x168 PF: > { %s13_s12 = sadd.s32 1, %s3710_s12  }
 0x169   : > { %p10_p4 = scmp.ge.s32.totalorder %s13_s12, 4  }
 0x16b   :  { %12 = sbr.rel (!%p10_p4) target bundleno = 1 (0x1), region = 82 }

</bundles_post_ra>
